<compile_context>
chip_gen: v7x
topology: tpu7x:2x2x1
jax: 0.10.0
libtpu: 0.0.40
codegen_flags: <defaults>
</compile_context>

<pallas_src>
import functools

import jax
import jax.numpy as jnp
from jax.experimental import pallas as pl
from jax.experimental.pallas import tpu as pltpu


def _blur_kernel(x_ref, o_ref, *, H, W):
    # x_ref / o_ref: (tc, H*W) lane-dense slabs in VMEM.
    L = H * W
    tc = x_ref.shape[0]

    x = x_ref[...].astype(jnp.float32)

    # Vertical [1, 2, 1]: neighbours are flat shifts by +-W.  The shifted-in
    # zeros land exactly on the h == 0 / h == H-1 taps, i.e. they implement
    # the conv's zero padding -- no masking needed.
    zW = jnp.zeros((tc, W), dtype=jnp.float32)
    up = jnp.concatenate([zW, x[:, : L - W]], axis=1)    # x[(h-1)*W + w]
    down = jnp.concatenate([x[:, W:], zW], axis=1)       # x[(h+1)*W + w]
    v = up + 2.0 * x + down

    # Horizontal [1, 2, 1]: flat shifts by +-1.  Lanes that would pull a value
    # across an image-row boundary (w == 0 / w == W-1) are masked to zero,
    # matching the conv's zero padding.
    z1 = jnp.zeros((tc, 1), dtype=jnp.float32)
    left = jnp.concatenate([z1, v[:, : L - 1]], axis=1)  # v[h*W + (w-1)]
    right = jnp.concatenate([v[:, 1:], z1], axis=1)      # v[h*W + (w+1)]

    col = jax.lax.broadcasted_iota(jnp.int32, (tc, L), 1) % W
    left = jnp.where(col == 0, 0.0, left)
    right = jnp.where(col == W - 1, 0.0, right)

    out = (left + 2.0 * v + right) * jnp.float32(1.0 / 16.0)
    o_ref[...] = out.astype(o_ref.dtype)


def _choose_block_rows(N, L, itemsize):
    """Rows (fused B*C) per block: ~4 MiB of input, multiple of 8, <= N."""
    target_in_bytes = 4 * 1024 * 1024
    tc = max(1, target_in_bytes // (L * itemsize))
    if tc >= N:
        # Whole problem fits in one modest block.  If it is big enough, split
        # once so the "parallel" axis can shard across v7x's two TensorCores.
        if N >= 16:
            half = ((N + 1) // 2 + 7) // 8 * 8
            if half < N:
                return half
        return N
    tc = max(8, (tc // 8) * 8)   # block 2nd-minor dim must be a multiple of 8
    return min(tc, N)


def blur(x, *, block_rows=None):
    """Depthwise 3x3 binomial blur, padding=1. x: (B, C, H, W)."""
    B, C, H, W = x.shape
    N = B * C
    L = H * W
    itemsize = jnp.dtype(x.dtype).itemsize

    # Free reshape (row-major contiguous): no data movement, no extra HBM pass.
    x2 = x.reshape(N, L)

    tc = block_rows if block_rows is not None else _choose_block_rows(N, L, itemsize)
    tc = min(tc, N)
    n_blocks = pl.cdiv(N, tc)

    # Explicit VMEM budget: double-buffered in+out blocks plus f32 temporaries
    # the compiler may spill.  Floor 48 MiB (above the 16/32 MiB scoped
    # defaults on v5e/v6e), capped at 75% of physical VMEM so v7x (64 MiB per
    # TC) is respected.
    try:
        vmem_cap = int(getattr(pltpu.get_tpu_info(), "vmem_capacity_bytes",
                               64 * 1024 * 1024))
    except Exception:
        vmem_cap = 64 * 1024 * 1024
    est_vmem = 4 * tc * L * itemsize + 4 * tc * L * 4
    vmem_limit = max(48 * 1024 * 1024, int(est_vmem * 1.25))
    vmem_limit = min(vmem_limit, int(0.75 * vmem_cap))
    # TODO(synk): very large H*W (single rows overflowing VMEM) would need an
    # extra spatial grid axis with halo exchange; not needed at these sizes.

    cost = pl.CostEstimate(
        flops=int(10 * N * L),
        transcendentals=0,
        bytes_accessed=int(2 * N * L * itemsize),   # unpadded read + write
    )

    kernel = functools.partial(_blur_kernel, H=H, W=W)

    out = pl.pallas_call(
        kernel,
        out_shape=jax.ShapeDtypeStruct((N, L), x.dtype),
        grid_spec=pltpu.PrefetchScalarGridSpec(
            num_scalar_prefetch=0,
            grid=(n_blocks,),
            in_specs=[pl.BlockSpec((tc, L), lambda i: (i, 0))],
            out_specs=pl.BlockSpec((tc, L), lambda i: (i, 0)),
        ),
        compiler_params=pltpu.CompilerParams(
            dimension_semantics=("parallel",),
            vmem_limit_bytes=vmem_limit,
        ),
        cost_estimate=cost,
    )(x2)

    return out.reshape(B, C, H, W)


def _blur_ref(x):
    """Plain-JAX reference: 9-tap depthwise conv with the binomial kernel."""
    B, C, H, W = x.shape
    k = jnp.array([[1.0, 2.0, 1.0],
                   [2.0, 4.0, 2.0],
                   [1.0, 2.0, 1.0]], dtype=jnp.float32) / 16.0
    xp = jnp.pad(x.astype(jnp.float32), ((0, 0), (0, 0), (1, 1), (1, 1)))
    out = jnp.zeros((B, C, H, W), dtype=jnp.float32)
    for dy in range(3):
        for dx in range(3):
            out = out + k[dy, dx] * xp[:, :, dy:dy + H, dx:dx + W]
    return out.astype(x.dtype)


if __name__ == "__main__":
    key = jax.random.PRNGKey(0)

    batch, channels, spatial = 2, 4, 16
    x = jax.random.normal(key, (batch, channels, spatial, spatial), dtype=jnp.float32)

    out = blur(x)
    jax.block_until_ready(out)

    ref = _blur_ref(x)
    assert out.shape == ref.shape, "shape mismatch vs reference"
    assert jnp.allclose(out, ref, atol=1e-5, rtol=1e-5), "mismatch vs reference"

    # TODO(synk): custom autograd (BlurFunctionBackward) not implemented — forward only.
    print("KERNEL_OK")
</pallas_src>

<mosaic_0001>
module attributes {stable_mosaic.version = 11 : i64} {
  func.func @_blur_kernel(%arg0: i32, %arg1: memref<8x256xf32, #tpu.memory_space<vmem>>, %arg2: memref<8x256xf32, #tpu.memory_space<vmem>>) attributes {dimension_semantics = [#tpu.dimension_semantics<parallel>], iteration_bounds = array<i64: 1>, scalar_prefetch = 0 : i64, scratch_operands = 0 : i64, tpu.core_type = #tpu.core_type<tc>, window_params = [{transform_indices = @transform_0, window_bounds = array<i64: 8, 256>}, {transform_indices = @transform_1, window_bounds = array<i64: 8, 256>}]} {
    %c0 = arith.constant 0 : index
    %c0_0 = arith.constant 0 : index
    %0 = vector.load %arg1[%c0, %c0_0] : memref<8x256xf32, #tpu.memory_space<vmem>>, vector<8x256xf32>
    %cst = arith.constant 0.000000e+00 : f32
    %1 = vector.broadcast %cst : f32 to vector<8x16xf32>
    %2 = vector.extract_strided_slice %0 {offsets = [0, 0], sizes = [8, 240], strides = [1, 1]} : vector<8x256xf32> to vector<8x240xf32>
    %3 = tpu.concatenate %1, %2 in 1 : vector<8x16xf32>, vector<8x240xf32> -> vector<8x256xf32>
    %4 = vector.extract_strided_slice %0 {offsets = [0, 16], sizes = [8, 240], strides = [1, 1]} : vector<8x256xf32> to vector<8x240xf32>
    %5 = tpu.concatenate %4, %1 in 1 : vector<8x240xf32>, vector<8x16xf32> -> vector<8x256xf32>
    %cst_1 = arith.constant 2.000000e+00 : f32
    %6 = vector.broadcast %cst_1 : f32 to vector<8x256xf32>
    %7 = arith.mulf %6, %0 : vector<8x256xf32>
    %8 = arith.addf %3, %7 : vector<8x256xf32>
    %9 = arith.addf %8, %5 : vector<8x256xf32>
    %cst_2 = arith.constant 0.000000e+00 : f32
    %10 = vector.broadcast %cst_2 : f32 to vector<8x1xf32>
    %11 = vector.extract_strided_slice %9 {offsets = [0, 0], sizes = [8, 255], strides = [1, 1]} : vector<8x256xf32> to vector<8x255xf32>
    %12 = tpu.concatenate %10, %11 in 1 : vector<8x1xf32>, vector<8x255xf32> -> vector<8x256xf32>
    %13 = vector.extract_strided_slice %9 {offsets = [0, 1], sizes = [8, 255], strides = [1, 1]} : vector<8x256xf32> to vector<8x255xf32>
    %14 = tpu.concatenate %13, %10 in 1 : vector<8x255xf32>, vector<8x1xf32> -> vector<8x256xf32>
    %15 = tpu.iota {dimensions = array<i32: 1>} : vector<8x256xi32>
    %c16_i32 = arith.constant 16 : i32
    %c0_i32 = arith.constant 0 : i32
    %16 = arith.cmpi eq, %c16_i32, %c0_i32 : i32
    %c1_i32 = arith.constant 1 : i32
    %17 = arith.select %16, %c1_i32, %c16_i32 : i32
    %18 = vector.broadcast %17 : i32 to vector<8x256xi32>
    %19 = arith.remsi %15, %18 : vector<8x256xi32>
    %c0_i32_3 = arith.constant 0 : i32
    %20 = vector.broadcast %c0_i32_3 : i32 to vector<8x256xi32>
    %21 = arith.cmpi ne, %19, %20 : vector<8x256xi32>
    %c0_i32_4 = arith.constant 0 : i32
    %22 = vector.broadcast %c0_i32_4 : i32 to vector<8x256xi32>
    %23 = arith.cmpi slt, %19, %22 : vector<8x256xi32>
    %c0_i32_5 = arith.constant 0 : i32
    %24 = arith.cmpi slt, %17, %c0_i32_5 : i32
    %25 = vector.broadcast %24 : i1 to vector<8x256xi1>
    %26 = vector.broadcast %25 : vector<8x256xi1> to vector<8x256xi1>
    %27 = arith.xori %23, %26 : vector<8x256xi1>
    %28 = arith.andi %27, %21 : vector<8x256xi1>
    %29 = vector.broadcast %17 : i32 to vector<8x256xi32>
    %30 = arith.addi %19, %29 : vector<8x256xi32>
    %31 = arith.select %28, %30, %19 : vector<8x256xi1>, vector<8x256xi32>
    %c0_i32_6 = arith.constant 0 : i32
    %32 = vector.broadcast %c0_i32_6 : i32 to vector<8x256xi32>
    %33 = arith.cmpi eq, %31, %32 : vector<8x256xi32>
    %cst_7 = arith.constant 0.000000e+00 : f32
    %34 = vector.broadcast %cst_7 : f32 to vector<8x256xf32>
    %35 = arith.select %33, %34, %12 : vector<8x256xi1>, vector<8x256xf32>
    %c15_i32 = arith.constant 15 : i32
    %36 = vector.broadcast %c15_i32 : i32 to vector<8x256xi32>
    %37 = arith.cmpi eq, %31, %36 : vector<8x256xi32>
    %cst_8 = arith.constant 0.000000e+00 : f32
    %38 = vector.broadcast %cst_8 : f32 to vector<8x256xf32>
    %39 = arith.select %37, %38, %14 : vector<8x256xi1>, vector<8x256xf32>
    %cst_9 = arith.constant 2.000000e+00 : f32
    %40 = vector.broadcast %cst_9 : f32 to vector<8x256xf32>
    %41 = arith.mulf %40, %9 : vector<8x256xf32>
    %42 = arith.addf %35, %41 : vector<8x256xf32>
    %43 = arith.addf %42, %39 : vector<8x256xf32>
    %cst_10 = arith.constant 6.250000e-02 : f32
    %44 = vector.broadcast %cst_10 : f32 to vector<8x256xf32>
    %45 = arith.mulf %43, %44 : vector<8x256xf32>
    %c0_11 = arith.constant 0 : index
    %c0_12 = arith.constant 0 : index
    %46 = vector.load %arg2[%c0_11, %c0_12] : memref<8x256xf32, #tpu.memory_space<vmem>>, vector<8x256xf32>
    tpu.vector_store %arg2[%c0_11, %c0_12], %45 {strides = array<i32>} : memref<8x256xf32, #tpu.memory_space<vmem>>, vector<8x256xf32>,
    return
  }
  func.func @transform_0(%arg0: i32) -> (i32, i32) {
    %c0_i32 = arith.constant 0 : i32
    %c0_i32_0 = arith.constant 0 : i32
    return %arg0, %c0_i32 : i32, i32
  }
  func.func @transform_1(%arg0: i32) -> (i32, i32) {
    %c0_i32 = arith.constant 0 : i32
    %c0_i32_0 = arith.constant 0 : i32
    return %arg0, %c0_i32 : i32, i32
  }
}

</mosaic_0001>

<bundles_post_ra>
// kernel: tpu_custom_call.1
= control target key start
LH: loop header
LB: loop body
LE: loop exit
PB: predicated region body
PF: predicated region fallthrough
CT: control target
= control target key end

     0   :  { %6 = vsyncpa [#allocation3], 0  ;;  %s223_s0 = inlined_call_operand.hbm [shape: f32[8,256], index: 0, kind: input, shape index: {}]   ;;  %s224_s1 = inlined_call_operand.hbm [shape: f32[8,256], index: 1, kind: output, shape index: {}]  }
   0x1   :  { %7 = vsyncpa [#allocation4], 0  ;;  %s183_s6 = smov [#allocation2]   ;;  %s135_s10 = scalar_lea.hbm %s223_s0, 256 }
   0x2   :  { %s14_s7 = sshll.u32 %s183_s6, 4  ;;  %p136_p0 = scmp.ne.s32.totalorder %s223_s0, %s135_s10  ;;  %s15_s7 = int_to_ptr.vmem [resolvable:$true] %s14_s7 }
   0x3   :  { %p139_p1 = scmp.lt.u32.totalorder %s135_s10, %s223_s0 }
   0x5   :  { %p141_p2 = pnand %p139_p1, %p136_p0 }
   0x7   :  { %144 = shalt.err (!%p141_p2)
}
   0x8   :  { %s145_s15 = scalar_lea.vmem %s15_s7, 256  ;;  %p150_p4 = scmp.lt.s32.totalorder %s15_s7, %s15_s7 }
   0x9   :  { %p146_p3 = scmp.ne.s32.totalorder %s15_s7, %s145_s15  ;;  %p151_p5 = scmp.lt.s32.totalorder %s145_s15, %s145_s15 }
   0xb   :  { %p152_p6 = por %p151_p5, %p150_p4 }
   0xd   :  { %p153_p7 = pnand %p152_p6, %p146_p3 }
   0xf   :  { %156 = shalt.err (!%p153_p7)
}
  0x10   :  { %17 = dma.hbm_to_vmem [thread:$0]  %s223_s0, 256, %s15_s7, [#allocation3]  }
  0x11   :  { %179 = dma.done.wait [#allocation3], 256  }
  0x12   :  { %180 = vsyncadd [#allocation3], 4294967040  ;;  %v21_v0 = vld [vmem:[#allocation2] sm:$0xff]  ;;  %s184_s18 = smov 112   ;;  %s185_s19 = smov 16   ;;  %v22_v1 = vld [vmem:[#allocation2 + $0x8] sm:$0xff]  ;;  %v69_v16 = vlaneseq }
  0x13   :  { %34 = vrot.lane.b32.xlu1 %v21_v0, %s184_s18  ;;  %25 = vrot.lane.b32.xlu0 %v21_v0, %s185_s19  ;;  %vm29_vm0 = vcmask 130048   ;;  %v43_v2 = vmul.f32 2.0, %v21_v0  ;;  %v44_v6 = vmul.f32 2.0, %v22_v1  ;;  %vm38_vm1 = vcmask 916480   ;;  %s186_s0 = smov 1   ;;  %s187_s20 = smov 127  }
  0x14   :  { %v70_v17 = vand.u32 127, %v69_v16  ;;  %vm55_vm2 = vcmask 7168   ;;  %vm64_vm5 = vcmask 1039360   ;;  %s188_s21 = smov [#allocation5]  }
  0x15   :  { %s120_s22 = sshll.u32 %s188_s21, 4  ;;  %s121_s22 = int_to_ptr.vmem [resolvable:$true] %s120_s22 }
  0x16   :  { %v71_v18 = vadd.s32 128, %v70_v17  ;;  %v76_v19 = vand.u32 15, %v70_v17  ;;  %s157_s23 = scalar_lea.vmem %s121_s22, 256  ;;  %p162_p9 = scmp.lt.s32.totalorder %s121_s22, %s121_s22 }
  0x17   :  { %36 = vrot.lane.b32.xlu1 %v22_v1, %s184_s18  ;;  %27 = vrot.lane.b32.xlu0 %v22_v1, %s185_s19  ;;  %p158_p8 = scmp.ne.s32.totalorder %s121_s22, %s157_s23  ;;  %p163_p10 = scmp.lt.s32.totalorder %s157_s23, %s157_s23 }
  0x18   :  { %v83_v20 = vand.u32 15, %v71_v18  ;;  %vm96_vm3 = vcmp.eq.s32.totalorder %v76_v19, 0  ;;  %vm100_vm6 = vcmp.eq.s32.totalorder %v76_v19, 15 }
  0x19   :  { %p164_p11 = por %p163_p10, %p162_p9 }
  0x1a   :  { %vm97_vm4 = vcmp.eq.s32.totalorder %v83_v20, 0  ;;  %vm101_vm7 = vcmp.eq.s32.totalorder %v83_v20, 15 }
  0x1b   :  { %p165_p12 = pnand %p164_p11, %p158_p8 }
  0x85   :  { %v35_v3 = vpop.permute.xlu1 %34  ;;  %v26_v4 = vpop.permute.xlu0 %25 }
  0x86   :  { %v33_v5 = vsel %vm29_vm0, 0.0, %v26_v4 }
  0x87   :  { %v45_v7 = vadd.f32 %v43_v2, %v33_v5 }
  0x89   :  { %v37_v8 = vpop.permute.xlu1 %36  ;;  %v28_v9 = vpop.permute.xlu0 %27 }
  0x8a   :  { %v39_v10 = vsel %vm38_vm1, %v35_v3, %v37_v8  ;;  %v42_v11 = vsel %vm38_vm1, %v37_v8, 0.0  ;;  %v30_v12 = vsel %vm29_vm0, %v26_v4, %v28_v9 }
  0x8b   :  { %v47_v13 = vadd.f32 %v45_v7, %v39_v10  ;;  %v46_v14 = vadd.f32 %v44_v6, %v30_v12 }
  0x8d   :  { %51 = vrot.lane.b32.xlu0 %v47_v13, %s186_s0  ;;  %v48_v15 = vadd.f32 %v46_v14, %v42_v11  ;;  %v104_v27 = vmul.f32 2.0, %v47_v13 }
  0x8f   :  { %53 = vrot.lane.b32.xlu1 %v48_v15, %s186_s0  ;;  %v105_v28 = vmul.f32 2.0, %v48_v15 }
  0x91   :  { %60 = vrot.lane.b32.xlu0 %v47_v13, %s187_s20 }
  0x93   :  { %62 = vrot.lane.b32.xlu1 %v48_v15, %s187_s20 }
  0xff   :  { %v52_v21 = vpop.permute.xlu0 %51 }
 0x100   :  { %v59_v22 = vsel %vm55_vm2, 0.0, %v52_v21 }
 0x101   :  { %v54_v23 = vpop.permute.xlu1 %53  ;;  %v98_v25 = vsel %vm96_vm3, 0.0, %v59_v22 }
 0x102   :  { %v56_v24 = vsel %vm55_vm2, %v52_v21, %v54_v23  ;;  %v106_v31 = vadd.f32 %v104_v27, %v98_v25 }
 0x103   :  { %v99_v26 = vsel %vm97_vm4, 0.0, %v56_v24  ;;  %v61_v29 = vpop.permute.xlu0 %60 }
 0x104   :  { %v107_v32 = vadd.f32 %v105_v28, %v99_v26 }
 0x105   :  { %v63_v30 = vpop.permute.xlu1 %62 }
 0x106   :  { %v65_v33 = vsel %vm64_vm5, %v61_v29, %v63_v30  ;;  %v68_v34 = vsel %vm64_vm5, %v63_v30, 0.0 }
 0x107   :  { %v102_v35 = vsel %vm100_vm6, 0.0, %v65_v33  ;;  %v103_v36 = vsel %vm101_vm7, 0.0, %v68_v34 }
 0x108   :  { %v108_v37 = vadd.f32 %v106_v31, %v102_v35  ;;  %v109_v38 = vadd.f32 %v107_v32, %v103_v36 }
 0x10a   :  { %v110_v39 = vmul.f32 0.0625, %v108_v37  ;;  %v111_v40 = vmul.f32 0.0625, %v109_v38 }
 0x10c   :  { %112 = vst [vmem:[#allocation5] sm:$0xff] %v110_v39  ;;  %113 = vst [vmem:[#allocation5 + $0x8] sm:$0xff] %v111_v40 }
 0x10d   :  { %168 = shalt.err (!%p165_p12)
}
 0x10e   :  { %s169_s26 = scalar_lea.hbm %s224_s1, 256 }
 0x10f   :  { %p170_p13 = scmp.ne.s32.totalorder %s224_s1, %s169_s26  ;;  %p173_p0 = scmp.lt.u32.totalorder %s169_s26, %s224_s1 }
 0x111   :  { %p175_p1 = pnand %p173_p0, %p170_p13 }
 0x113   :  { %178 = shalt.err (!%p175_p1)
}
 0x114   :  { %123 = dma.vmem_to_hbm [thread:$0]  %s121_s22, 256, %s224_s1, [#allocation4]  }
 0x115   :  { %181 = dma.done.wait [#allocation4], 256  }
 0x116   :  { %182 = vsyncadd [#allocation4], 4294967040 }
 0x117   :  { %127 = vsyncpa [#allocation3], 1 }
 0x118   :  { %128 = vsyncpa [#allocation4], 1 }

</bundles_post_ra>
